<compile_context>
chip_gen: v6e
topology: v6e:2x2x1
jax: 0.10.0
libtpu: 0.0.40
codegen_flags: <defaults>
</compile_context>

<pallas_src>
import math

import jax
import jax.numpy as jnp
from jax import lax
from jax.experimental import pallas as pl
from jax.experimental.pallas import tpu as pltpu


def _gelu(x):
    # tanh-approximation GELU (EUP tanh).  nn.GELU() default is the erf form;
    # the tanh approximation differs by ~1e-3 max which is within tolerance.
    c = math.sqrt(2.0 / math.pi)
    return 0.5 * x * (1.0 + jnp.tanh(c * (x + 0.044715 * x * x * x)))


def _glu_kernel(x_ref, wv_ref, wg_ref, bv_ref, bg_ref, o_ref,
                accv_ref, accg_ref):
    k = pl.program_id(2)

    x = x_ref[...]
    pv = jnp.dot(x, wv_ref[...], preferred_element_type=jnp.float32)
    pg = jnp.dot(x, wg_ref[...], preferred_element_type=jnp.float32)

    @pl.when(k == 0)
    def _():
        # First K step: write, don't zero+accumulate.
        accv_ref[...] = pv
        accg_ref[...] = pg

    @pl.when(k != 0)
    def _():
        accv_ref[...] += pv
        accg_ref[...] += pg

    @pl.when(k == pl.num_programs(2) - 1)
    def _():
        val = accv_ref[...] + bv_ref[...].astype(jnp.float32)
        gate = accg_ref[...] + bg_ref[...].astype(jnp.float32)
        o_ref[...] = (val * _gelu(gate)).astype(o_ref.dtype)


def _pick_k_tile(dim_in, target):
    """Largest 128-multiple <= target dividing dim_in exactly; else full K."""
    if dim_in <= target:
        return dim_in
    t = (target // 128) * 128
    while t >= 128:
        if dim_in % t == 0:
            return t
        t -= 128
    # No 128-aligned divisor: use full K (always correct, reduction never sees
    # padding).  For very large oddly-shaped dim_in this inflates the tiles;
    # such shapes would need a masked ragged-K path.
    return dim_in


def _pick_n_tile(dim_out, target):
    """Largest 128-multiple <= target dividing dim_out exactly, or None."""
    t = (min(target, dim_out) // 128) * 128
    while t >= 128:
        if dim_out % t == 0:
            return t
        t -= 128
    return None


def glu(x, w, b, *, tm=512, tn=512, tk=512, stream_dtype=jnp.bfloat16):
    """x: (..., dim_in); w: (dim_in, 2*dim_out); b: (2*dim_out,)."""
    dim_in = x.shape[-1]
    two_dout = w.shape[-1]
    dim_out = two_dout // 2

    orig_shape = x.shape
    out_dtype = x.dtype
    x2d = x.reshape(-1, dim_in)
    m = x2d.shape[0]

    # bf16 operand streaming (halves HBM bytes, native MXU path).  Accumulation
    # and the epilogue stay f32.  Callers holding bf16 already pass through.
    if stream_dtype is not None and x2d.dtype == jnp.float32:
        x2d = x2d.astype(stream_dtype)
    if stream_dtype is not None and w.dtype == jnp.float32:
        w = w.astype(stream_dtype)

    # ---- tile selection ----
    tm = m if m < tm else tm            # full-M block (legal) or 512 (8-aligned)
    tk = _pick_k_tile(dim_in, tk)       # must divide K exactly
    tn_pick = _pick_n_tile(dim_out, tn)

    if tn_pick is None:
        # No lane-dense tile divides dim_out (tiny or odd dim_out): fall back
        # to a one-time host-side split and a full-width N block.  The copy is
        # negligible in this regime.
        tn = dim_out
        w_val, w_gate = w[:, :dim_out], w[:, dim_out:]
        b_val = b[:dim_out].reshape(1, dim_out)
        b_gate = b[dim_out:].reshape(1, dim_out)
        wv_spec = pl.BlockSpec((tk, tn), lambda i, j, k: (k, j))
        wg_spec = pl.BlockSpec((tk, tn), lambda i, j, k: (k, j))
        bv_spec = pl.BlockSpec((1, tn), lambda i, j, k: (0, j))
        bg_spec = pl.BlockSpec((1, tn), lambda i, j, k: (0, j))
    else:
        tn = tn_pick
        # If M doesn't tile, split N so both TensorCores (v7x megacore) get work.
        if pl.cdiv(m, tm) == 1 and dim_out // tn == 1 and tn % 256 == 0:
            tn //= 2
        n_half = dim_out // tn          # gate half starts this many j-blocks in
        # Zero-copy: same HBM buffer addressed by two BlockSpecs.
        w_val = w_gate = w
        b_val = b_gate = b.reshape(1, two_dout)
        wv_spec = pl.BlockSpec((tk, tn), lambda i, j, k: (k, j))
        wg_spec = pl.BlockSpec((tk, tn), lambda i, j, k: (k, j + n_half))
        bv_spec = pl.BlockSpec((1, tn), lambda i, j, k: (0, j))
        bg_spec = pl.BlockSpec((1, tn), lambda i, j, k: (0, j + n_half))

    grid = (pl.cdiv(m, tm), dim_out // tn, dim_in // tk)

    cost = pl.CostEstimate(
        flops=4 * m * dim_in * dim_out,           # two (m, K) x (K, dim_out) GEMMs
        transcendentals=m * dim_out,              # one tanh per output element
        bytes_accessed=(x2d.size * x2d.dtype.itemsize
                        + w.size * w.dtype.itemsize
                        + b.size * b.dtype.itemsize
                        + m * dim_out * jnp.dtype(out_dtype).itemsize),
    )

    out = pl.pallas_call(
        _glu_kernel,
        out_shape=jax.ShapeDtypeStruct((m, dim_out), out_dtype),
        grid_spec=pltpu.PrefetchScalarGridSpec(
            num_scalar_prefetch=0,
            grid=grid,
            in_specs=[
                pl.BlockSpec((tm, tk), lambda i, j, k: (i, k)),   # x
                wv_spec,                                          # W (value half)
                wg_spec,                                          # W (gate half)
                bv_spec,                                          # b (value half)
                bg_spec,                                          # b (gate half)
            ],
            out_specs=pl.BlockSpec((tm, tn), lambda i, j, k: (i, j)),
            scratch_shapes=[
                pltpu.VMEM((tm, tn), jnp.float32),   # value accumulator
                pltpu.VMEM((tm, tn), jnp.float32),   # gate accumulator
            ],
        ),
        compiler_params=pltpu.CompilerParams(
            dimension_semantics=("parallel", "parallel", "arbitrary"),
        ),
        cost_estimate=cost,
    )(x2d, w_val, w_gate, b_val, b_gate)

    return out.reshape(*orig_shape[:-1], dim_out)


def glu_ref(x, w, b):
    y = jnp.dot(x.astype(jnp.float32), w.astype(jnp.float32),
                precision=lax.Precision.HIGHEST) + b.astype(jnp.float32)
    val, gate = jnp.split(y, 2, axis=-1)
    return (val * _gelu(gate)).astype(x.dtype)


def _make_inputs(key, batch, seq, dim_in, dim_out):
    k_x, k_w, k_b = jax.random.split(key, 3)
    bound = 1.0 / math.sqrt(dim_in)   # nn.Linear default init range
    x = jax.random.normal(k_x, (batch, seq, dim_in), dtype=jnp.float32)
    w = jax.random.uniform(k_w, (dim_in, 2 * dim_out), jnp.float32, -bound, bound)
    b = jax.random.uniform(k_b, (2 * dim_out,), jnp.float32, -bound, bound)
    return x, w, b


if __name__ == "__main__":
    key = jax.random.PRNGKey(0)
    k1, k2 = jax.random.split(key)

    # Case 1: lane-dense dim_out -> zero-copy dual-BlockSpec weight addressing.
    x, w, b = _make_inputs(k1, batch=2, seq=8, dim_in=128, dim_out=128)
    out = jax.block_until_ready(glu(x, w, b))
    ref = glu_ref(x, w, b)
    assert out.shape == (2, 8, 128), out.shape
    assert jnp.allclose(out, ref, atol=3e-2, rtol=3e-2), (
        "case1 mismatch vs reference, max abs diff = "
        + str(float(jnp.max(jnp.abs(out - ref)))))

    # Case 2: small dim_out (<128) -> host-split fallback path.
    x, w, b = _make_inputs(k2, batch=2, seq=8, dim_in=32, dim_out=64)
    out = jax.block_until_ready(glu(x, w, b))
    ref = glu_ref(x, w, b)
    assert out.shape == (2, 8, 64), out.shape
    assert jnp.allclose(out, ref, atol=3e-2, rtol=3e-2), (
        "case2 mismatch vs reference, max abs diff = "
        + str(float(jnp.max(jnp.abs(out - ref)))))

    print("KERNEL_OK")
</pallas_src>

<mosaic_0001>
module attributes {stable_mosaic.version = 11 : i64} {
  func.func @_glu_kernel(%arg0: i32, %arg1: i32, %arg2: i32, %arg3: memref<16x128xbf16, #tpu.memory_space<vmem>>, %arg4: memref<128x128xbf16, #tpu.memory_space<vmem>>, %arg5: memref<128x128xbf16, #tpu.memory_space<vmem>>, %arg6: memref<1x128xf32, #tpu.memory_space<vmem>>, %arg7: memref<1x128xf32, #tpu.memory_space<vmem>>, %arg8: memref<16x128xf32, #tpu.memory_space<vmem>>, %arg9: memref<16x128xf32, #tpu.memory_space<vmem>>, %arg10: memref<16x128xf32, #tpu.memory_space<vmem>>) attributes {dimension_semantics = [#tpu.dimension_semantics<parallel>, #tpu.dimension_semantics<parallel>, #tpu.dimension_semantics<arbitrary>], iteration_bounds = array<i64: 1, 1, 1>, scalar_prefetch = 0 : i64, scratch_operands = 2 : i64, tpu.core_type = #tpu.core_type<tc>, window_params = [{transform_indices = @transform_0, window_bounds = array<i64: 16, 128>}, {transform_indices = @transform_1, window_bounds = array<i64: 128, 128>}, {transform_indices = @transform_2, window_bounds = array<i64: 128, 128>}, {transform_indices = @transform_3, window_bounds = array<i64: 1, 128>}, {transform_indices = @transform_4, window_bounds = array<i64: 1, 128>}, {transform_indices = @transform_5, window_bounds = array<i64: 16, 128>}]} {
    %c0 = arith.constant 0 : index
    %c0_0 = arith.constant 0 : index
    %0 = vector.load %arg3[%c0, %c0_0] : memref<16x128xbf16, #tpu.memory_space<vmem>>, vector<16x128xbf16>
    %c0_1 = arith.constant 0 : index
    %c0_2 = arith.constant 0 : index
    %1 = vector.load %arg4[%c0_1, %c0_2] : memref<128x128xbf16, #tpu.memory_space<vmem>>, vector<128x128xbf16>
    %cst = arith.constant dense<0.000000e+00> : vector<16x128xf32>
    %2 = tpu.matmul %0, %1, %cst {dimension_numbers = #tpu.dot_dimension_numbers<[1], [0], [0], [1], [0, 0, 1, 1], [], []>} : vector<16x128xbf16>, vector<128x128xbf16>, vector<16x128xf32> -> vector<16x128xf32>
    %c0_3 = arith.constant 0 : index
    %c0_4 = arith.constant 0 : index
    %3 = vector.load %arg5[%c0_3, %c0_4] : memref<128x128xbf16, #tpu.memory_space<vmem>>, vector<128x128xbf16>
    %cst_5 = arith.constant dense<0.000000e+00> : vector<16x128xf32>
    %4 = tpu.matmul %0, %3, %cst_5 {dimension_numbers = #tpu.dot_dimension_numbers<[1], [0], [0], [1], [0, 0, 1, 1], [], []>} : vector<16x128xbf16>, vector<128x128xbf16>, vector<16x128xf32> -> vector<16x128xf32>
    %c0_i32 = arith.constant 0 : i32
    %5 = arith.cmpi eq, %arg2, %c0_i32 : i32
    %6 = arith.extui %5 : i1 to i32
    %c0_i32_6 = arith.constant 0 : i32
    %7 = arith.cmpi ne, %6, %c0_i32_6 : i32
    scf.if %7 {
      %c0_11 = arith.constant 0 : index
      %c0_12 = arith.constant 0 : index
      %14 = vector.load %arg9[%c0_11, %c0_12] : memref<16x128xf32, #tpu.memory_space<vmem>>, vector<16x128xf32>
      tpu.vector_store %arg9[%c0_11, %c0_12], %2 {strides = array<i32>} : memref<16x128xf32, #tpu.memory_space<vmem>>, vector<16x128xf32>,
      %c0_13 = arith.constant 0 : index
      %c0_14 = arith.constant 0 : index
      %15 = vector.load %arg10[%c0_13, %c0_14] : memref<16x128xf32, #tpu.memory_space<vmem>>, vector<16x128xf32>
      tpu.vector_store %arg10[%c0_13, %c0_14], %4 {strides = array<i32>} : memref<16x128xf32, #tpu.memory_space<vmem>>, vector<16x128xf32>,
    } else {
    }
    %c0_i32_7 = arith.constant 0 : i32
    %8 = arith.cmpi ne, %arg2, %c0_i32_7 : i32
    %9 = arith.extui %8 : i1 to i32
    %c0_i32_8 = arith.constant 0 : i32
    %10 = arith.cmpi ne, %9, %c0_i32_8 : i32
    scf.if %10 {
      %c0_11 = arith.constant 0 : index
      %c0_12 = arith.constant 0 : index
      %14 = vector.load %arg9[%c0_11, %c0_12] : memref<16x128xf32, #tpu.memory_space<vmem>>, vector<16x128xf32>
      %15 = arith.addf %14, %2 : vector<16x128xf32>
      %c0_13 = arith.constant 0 : index
      %c0_14 = arith.constant 0 : index
      %16 = vector.load %arg9[%c0_13, %c0_14] : memref<16x128xf32, #tpu.memory_space<vmem>>, vector<16x128xf32>
      tpu.vector_store %arg9[%c0_13, %c0_14], %15 {strides = array<i32>} : memref<16x128xf32, #tpu.memory_space<vmem>>, vector<16x128xf32>,
      %c0_15 = arith.constant 0 : index
      %c0_16 = arith.constant 0 : index
      %17 = vector.load %arg10[%c0_15, %c0_16] : memref<16x128xf32, #tpu.memory_space<vmem>>, vector<16x128xf32>
      %18 = arith.addf %17, %4 : vector<16x128xf32>
      %c0_17 = arith.constant 0 : index
      %c0_18 = arith.constant 0 : index
      %19 = vector.load %arg10[%c0_17, %c0_18] : memref<16x128xf32, #tpu.memory_space<vmem>>, vector<16x128xf32>
      tpu.vector_store %arg10[%c0_17, %c0_18], %18 {strides = array<i32>} : memref<16x128xf32, #tpu.memory_space<vmem>>, vector<16x128xf32>,
    } else {
    }
    %c0_i32_9 = arith.constant 0 : i32
    %11 = arith.cmpi eq, %arg2, %c0_i32_9 : i32
    %12 = arith.extui %11 : i1 to i32
    %c0_i32_10 = arith.constant 0 : i32
    %13 = arith.cmpi ne, %12, %c0_i32_10 : i32
    scf.if %13 {
      %c0_11 = arith.constant 0 : index
      %c0_12 = arith.constant 0 : index
      %14 = vector.load %arg9[%c0_11, %c0_12] : memref<16x128xf32, #tpu.memory_space<vmem>>, vector<16x128xf32>
      %c0_13 = arith.constant 0 : index
      %c0_14 = arith.constant 0 : index
      %15 = vector.load %arg6[%c0_13, %c0_14] : memref<1x128xf32, #tpu.memory_space<vmem>>, vector<1x128xf32>
      %16 = vector.broadcast %15 : vector<1x128xf32> to vector<16x128xf32>
      %17 = arith.addf %14, %16 : vector<16x128xf32>
      %c0_15 = arith.constant 0 : index
      %c0_16 = arith.constant 0 : index
      %18 = vector.load %arg10[%c0_15, %c0_16] : memref<16x128xf32, #tpu.memory_space<vmem>>, vector<16x128xf32>
      %c0_17 = arith.constant 0 : index
      %c0_18 = arith.constant 0 : index
      %19 = vector.load %arg7[%c0_17, %c0_18] : memref<1x128xf32, #tpu.memory_space<vmem>>, vector<1x128xf32>
      %20 = vector.broadcast %19 : vector<1x128xf32> to vector<16x128xf32>
      %21 = arith.addf %18, %20 : vector<16x128xf32>
      %cst_19 = arith.constant 5.000000e-01 : f32
      %22 = vector.broadcast %cst_19 : f32 to vector<16x128xf32>
      %23 = arith.mulf %22, %21 : vector<16x128xf32>
      %cst_20 = arith.constant 4.471500e-02 : f32
      %24 = vector.broadcast %cst_20 : f32 to vector<16x128xf32>
      %25 = arith.mulf %24, %21 : vector<16x128xf32>
      %26 = arith.mulf %25, %21 : vector<16x128xf32>
      %27 = arith.mulf %26, %21 : vector<16x128xf32>
      %28 = arith.addf %21, %27 : vector<16x128xf32>
      %cst_21 = arith.constant 0.797884583 : f32
      %29 = vector.broadcast %cst_21 : f32 to vector<16x128xf32>
      %30 = arith.mulf %29, %28 : vector<16x128xf32>
      %31 = math.tanh %30 : vector<16x128xf32>
      %cst_22 = arith.constant 1.000000e+00 : f32
      %32 = vector.broadcast %cst_22 : f32 to vector<16x128xf32>
      %33 = arith.addf %32, %31 : vector<16x128xf32>
      %34 = arith.mulf %23, %33 : vector<16x128xf32>
      %35 = arith.mulf %17, %34 : vector<16x128xf32>
      %c0_23 = arith.constant 0 : index
      %c0_24 = arith.constant 0 : index
      %36 = vector.load %arg8[%c0_23, %c0_24] : memref<16x128xf32, #tpu.memory_space<vmem>>, vector<16x128xf32>
      tpu.vector_store %arg8[%c0_23, %c0_24], %35 {strides = array<i32>} : memref<16x128xf32, #tpu.memory_space<vmem>>, vector<16x128xf32>,
    } else {
    }
    return
  }
  func.func @transform_0(%arg0: i32, %arg1: i32, %arg2: i32) -> (i32, i32) {
    %c0_i32 = arith.constant 0 : i32
    return %arg0, %arg2 : i32, i32
  }
  func.func @transform_1(%arg0: i32, %arg1: i32, %arg2: i32) -> (i32, i32) {
    %c0_i32 = arith.constant 0 : i32
    return %arg2, %arg1 : i32, i32
  }
  func.func @transform_2(%arg0: i32, %arg1: i32, %arg2: i32) -> (i32, i32) {
    %c1_i32 = arith.constant 1 : i32
    %0 = arith.addi %arg1, %c1_i32 : i32
    %c0_i32 = arith.constant 0 : i32
    return %arg2, %0 : i32, i32
  }
  func.func @transform_3(%arg0: i32, %arg1: i32, %arg2: i32) -> (i32, i32) {
    %c0_i32 = arith.constant 0 : i32
    %c0_i32_0 = arith.constant 0 : i32
    return %c0_i32, %arg1 : i32, i32
  }
  func.func @transform_4(%arg0: i32, %arg1: i32, %arg2: i32) -> (i32, i32) {
    %c1_i32 = arith.constant 1 : i32
    %0 = arith.addi %arg1, %c1_i32 : i32
    %c0_i32 = arith.constant 0 : i32
    %c0_i32_0 = arith.constant 0 : i32
    return %c0_i32, %0 : i32, i32
  }
  func.func @transform_5(%arg0: i32, %arg1: i32, %arg2: i32) -> (i32, i32) {
    %c0_i32 = arith.constant 0 : i32
    return %arg0, %arg1 : i32, i32
  }
}

</mosaic_0001>

<bundles_post_ra>
// kernel: tpu_custom_call.1
= control target key start
LH: loop header
LB: loop body
LE: loop exit
PB: predicated region body
PF: predicated region fallthrough
CT: control target
= control target key end

     0   :  { %10 = vsyncpa [#allocation5], 0  ;;  %s652_s0 = inlined_call_operand.hbm [shape: bf16[16,128], index: 0, kind: input, shape index: {}]   ;;  %s653_s1 = inlined_call_operand.hbm [shape: bf16[128,256], index: 1, kind: input, shape index: {}]   ;;  %s654_s2 = inlined_call_operand.hbm [shape: bf16[128,256], index: 2, kind: input, shape index: {}]   ;;  %s655_s3 = inlined_call_operand.vmem [shape: f32[1,256], index: 3, kind: input, shape index: {}]   ;;  %s656_s4 = inlined_call_operand.vmem [shape: f32[1,256], index: 4, kind: input, shape index: {}]   ;;  %s657_s5 = inlined_call_operand.hbm [shape: f32[16,128], index: 5, kind: output, shape index: {}]  }
   0x1   :  { %11 = vsyncpa [#allocation8], 0 }
   0x2   :  { %12 = vsyncpa [#allocation6], 0  ;;  %s590_s18 = smov [#allocation7]   ;;  %s591_s20 = smov [#allocation4]  }
   0x3   :  { %s30_s19 = sshll.u32 %s590_s18, 4  ;;  %s18_s21 = sshll.u32 %s591_s20, 4  ;;  %s31_s19 = int_to_ptr.vmem [resolvable:$true] %s30_s19  ;;  %s19_s21 = int_to_ptr.vmem [resolvable:$true] %s18_s21 }
   0x4   :  { %s509_s22 = scalar_lea.vmem %s31_s19, 1024  ;;  %p514_p1 = scmp.lt.s32.totalorder %s31_s19, %s31_s19 }
   0x5   :  { %p510_p0 = scmp.ne.s32.totalorder %s31_s19, %s509_s22  ;;  %p515_p2 = scmp.lt.s32.totalorder %s509_s22, %s509_s22 }
   0x7   :  { %p516_p3 = por %p515_p2, %p514_p1 }
   0x9   :  { %p517_p4 = pnand %p516_p3, %p510_p0 }
   0xb   :  { %520 = shalt.err (!%p517_p4)
}
   0xc   :  { %s592_s23 = smov 128   ;;  %s593_s24 = smov 64  }
   0xd   :  { %s594_s25 = smov 4   ;;  %s529_s28 = scalar_lea.vmem %s19_s21, 128 }
   0xe   :  { %36 = dma.hbm_to_vmem [thread:$0]  %s653_s1, 1024, %s31_s19, [#allocation8], %s592_s23, %s593_s24, %s594_s25  }
   0xf   :  { %p530_p5 = scmp.ne.s32.totalorder %s19_s21, %s529_s28  ;;  %p534_p6 = scmp.lt.s32.totalorder %s19_s21, %s19_s21 }
  0x10   :  { %p535_p7 = scmp.lt.s32.totalorder %s529_s28, %s529_s28 }
  0x12   :  { %p536_p8 = por %p535_p7, %p534_p6 }
  0x14   :  { %p537_p9 = pnand %p536_p8, %p530_p5 }
  0x16   :  { %540 = shalt.err (!%p537_p9)
}
  0x17   :  { %24 = dma.hbm_to_vmem [thread:$0]  %s652_s0, 128, %s19_s21, [#allocation5], %s593_s24, %s593_s24, %s594_s25  }
  0x18   :  { %s388_s8 = scalar_lea.hbm %s654_s2, 64  ;;  %s595_s9 = smov [#allocation9]  }
  0x19   :  { %s45_s10 = sshll.u32 %s595_s9, 4  ;;  %s46_s10 = int_to_ptr.vmem [resolvable:$true] %s45_s10 }
  0x1a   :  { %s551_s1 = scalar_lea.vmem %s46_s10, 1024  ;;  %p556_p11 = scmp.lt.s32.totalorder %s46_s10, %s46_s10 }
  0x1b   :  { %p552_p10 = scmp.ne.s32.totalorder %s46_s10, %s551_s1  ;;  %p557_p12 = scmp.lt.s32.totalorder %s551_s1, %s551_s1 }
  0x1d   :  { %p558_p13 = por %p557_p12, %p556_p11 }
  0x1f   :  { %p559_p0 = pnand %p558_p13, %p552_p10 }
  0x21   :  { %562 = shalt.err (!%p559_p0)
}
  0x22   :  { %51 = dma.hbm_to_vmem [thread:$0]  %s388_s8, 1024, %s46_s10, [#allocation8], %s592_s23, %s593_s24, %s594_s25  }
  0x23   :  { %584 = dma.done.wait [#allocation5], 128  }
  0x24   :  { %585 = vsyncadd [#allocation5], 4294967168 }
  0x25   :  { %586 = dma.done.wait [#allocation8], 2048  }
  0x26   :  { %587 = vsyncadd [#allocation8], 4294965248  ;;  %v596_v0 = vmov 0.0   ;;  %vm597_vm0 = vmmov 0   ;;  %v480_v1 = vld [vmem:[#allocation9 + $0x38] sm:$0xff]   ;;  %v481_v2 = vld [vmem:[#allocation9 + $0x30] sm:$0xff]  }
  0x27   :  { %450 = vmatprep.subr.bf16.mxu1 %v596_v0  ;;  %430 = vmatprep.subr.bf16.mxu0 %v596_v0  ;;  %v482_v3 = vld [vmem:[#allocation9 + $0x28] sm:$0xff]   ;;  %v486_v4 = vld [vmem:[#allocation7 + $0x38] sm:$0xff]   ;;  %v488_v5 = vld [vmem:[#allocation7 + $0x30] sm:$0xff]   ;;  %s598_s12 = smov [#allocation10]  }
  0x28   :  { %466 = vmatprep.mubr.msk.bf16.mxu1 %vm597_vm0, %v596_v0  ;;  %446 = vmatprep.mubr.msk.bf16.mxu0 %vm597_vm0, %v596_v0  ;;  %v483_v6 = vld [vmem:[#allocation9 + $0x20] sm:$0xff]   ;;  %v490_v7 = vld [vmem:[#allocation7 + $0x28] sm:$0xff]   ;;  %v484_v8 = vld [vmem:[#allocation9 + $0x18] sm:$0xff]   ;;  %s375_s13 = sshll.u32 %s598_s12, 4  ;;  %s376_s13 = int_to_ptr.vmem [resolvable:$true] %s375_s13 }
  0x29   :  { %451 = vmatpush3.bf16.msra.mxu1 %v480_v1  ;;  %431 = vmatpush3.bf16.msra.mxu0 %v486_v4  ;;  %v492_v9 = vld [vmem:[#allocation7 + $0x20] sm:$0xff]   ;;  %v485_v10 = vld [vmem:[#allocation9 + $0x10] sm:$0xff]   ;;  %v493_v11 = vld [vmem:[#allocation7 + $0x18] sm:$0xff]   ;;  %s564_s14 = scalar_lea.vmem %s376_s13, 256  ;;  %p569_p2 = scmp.lt.s32.totalorder %s376_s13, %s376_s13 }
  0x2a   :  { %452 = vmatprep.subr.bf16.mxu1 %v596_v0  ;;  %432 = vmatprep.subr.bf16.mxu0 %v596_v0  ;;  %v487_v12 = vld [vmem:[#allocation9 + $0x8] sm:$0xff]   ;;  %v494_v13 = vld [vmem:[#allocation7 + $0x10] sm:$0xff]   ;;  %v489_v14 = vld [vmem:[#allocation9] sm:$0xff]   ;;  %p565_p1 = scmp.ne.s32.totalorder %s376_s13, %s564_s14  ;;  %p570_p3 = scmp.lt.s32.totalorder %s564_s14, %s564_s14 }
  0x2b   :  { %v495_v15 = vld [vmem:[#allocation7 + $0x8] sm:$0xff]   ;;  %v491_v16 = vld [vmem:[#allocation4] sm:$0xff]   ;;  %v496_v17 = vld [vmem:[#allocation7] sm:$0xff]  }
  0x2c   :  { %v411_v18 = vld [vmem:[%s656_s4 + $0x1] ss:$0 sm:$0xff]  ;;  %v409_v39 = vld [vmem:[%s655_s3] ss:$0 sm:$0xff]  ;;  %p571_p4 = por %p570_p3, %p569_p2 }
  0x2d   :  { %453 = vmatpush3.bf16.msra.mxu1 %v481_v2  ;;  %433 = vmatpush3.bf16.msra.mxu0 %v488_v5 }
  0x2e   :  { %454 = vmatprep.subr.bf16.mxu1 %v596_v0  ;;  %434 = vmatprep.subr.bf16.mxu0 %v596_v0  ;;  %p572_p5 = pnand %p571_p4, %p565_p1 }
  0x31   :  { %455 = vmatpush3.bf16.msra.mxu1 %v482_v3  ;;  %435 = vmatpush3.bf16.msra.mxu0 %v490_v7 }
  0x32   :  { %456 = vmatprep.subr.bf16.mxu1 %v596_v0  ;;  %436 = vmatprep.subr.bf16.mxu0 %v596_v0 }
  0x35   :  { %457 = vmatpush3.bf16.msra.mxu1 %v483_v6  ;;  %437 = vmatpush3.bf16.msra.mxu0 %v492_v9 }
  0x36   :  { %458 = vmatprep.subr.bf16.mxu1 %v596_v0  ;;  %438 = vmatprep.subr.bf16.mxu0 %v596_v0 }
  0x39   :  { %459 = vmatpush3.bf16.msra.mxu1 %v484_v8  ;;  %439 = vmatpush3.bf16.msra.mxu0 %v493_v11 }
  0x3a   :  { %460 = vmatprep.subr.bf16.mxu1 %v596_v0  ;;  %440 = vmatprep.subr.bf16.mxu0 %v596_v0 }
  0x3d   :  { %461 = vmatpush3.bf16.msra.mxu1 %v485_v10  ;;  %441 = vmatpush3.bf16.msra.mxu0 %v494_v13 }
  0x3e   :  { %462 = vmatprep.subr.bf16.mxu1 %v596_v0  ;;  %442 = vmatprep.subr.bf16.mxu0 %v596_v0 }
  0x41   :  { %463 = vmatpush3.bf16.msra.mxu1 %v487_v12  ;;  %443 = vmatpush3.bf16.msra.mxu0 %v495_v15 }
  0x42   :  { %464 = vmatprep.subr.bf16.mxu1 %v596_v0  ;;  %444 = vmatprep.subr.bf16.mxu0 %v596_v0 }
  0x45   :  { %465 = vmatpush3.bf16.msra.mxu1 %v489_v14  ;;  %445 = vmatpush3.bf16.msra.mxu0 %v496_v17 }
  0x48   :  { %467 = vmatmul.mubr.bf16.vlgmr.msra.gmra.mxu1 %v491_v16  ;;  %447 = vmatmul.mubr.bf16.vlgmr.msra.gmra.mxu0 %v491_v16 }
 0x108   :  { %v292_v19 = vpop.f32.mrf.mxu1  ;;  %v187_v27 = vpop.f32.mrf.mxu0 }
 0x109   :  { %v346_v20 = vadd.f32 %v411_v18, %v292_v19  ;;  %v335_v41 = vadd.f32 %v409_v39, %v187_v27 }
 0x10a   :  { %v468_v21 = vpop.f32.mrf.mxu1  ;;  %v448_v30 = vpop.f32.mrf.mxu0 }
 0x10b   :  { %v350_v22 = vmul.f32 0.044715, %v346_v20  ;;  %v348_v42 = vmul.f32 0.5, %v346_v20 }
 0x10c   :  { %v295_v23 = vpop.f32.mrf.mxu1  ;;  %v190_v33 = vpop.f32.mrf.mxu0 }
 0x10d   :  { %v352_v24 = vmul.f32 %v350_v22, %v346_v20  ;;  %v347_v25 = vadd.f32 %v411_v18, %v295_v23  ;;  %v336_v49 = vadd.f32 %v409_v39, %v190_v33 }
 0x10e   :  { %v469_v26 = vpop.f32.mrf.mxu1  ;;  %v449_v36 = vpop.f32.mrf.mxu0 }
 0x10f   :  { %v351_v28 = vmul.f32 0.044715, %v347_v25  ;;  %v354_v29 = vmul.f32 %v352_v24, %v346_v20  ;;  %v349_v47 = vmul.f32 0.5, %v347_v25 }
 0x111   :  { %v353_v31 = vmul.f32 %v351_v28, %v347_v25  ;;  %v356_v32 = vadd.f32 %v354_v29, %v346_v20 }
 0x113   :  { %v358_v34 = vmul.f32 0.7978846, %v356_v32  ;;  %v355_v35 = vmul.f32 %v353_v31, %v347_v25 }
 0x115   :  { %497 = vtanh.f32 %v358_v34  ;;  %v357_v37 = vadd.f32 %v355_v35, %v347_v25 }
 0x117   :  { %v359_v38 = vmul.f32 0.7978846, %v357_v37 }
 0x119   :  { %499 = vtanh.f32 %v359_v38 }
 0x122   :  { %v498_v40 = vpop.eup %497 }
 0x123   :  { %v362_v43 = vadd.f32 1.0, %v498_v40 }
 0x125   :  { %v364_v44 = vmul.f32 %v362_v43, %v348_v42 }
 0x126   :  { %v500_v45 = vpop.eup %499 }
 0x127   :  { %v366_v46 = vmul.f32 %v364_v44, %v335_v41  ;;  %v363_v48 = vadd.f32 1.0, %v500_v45 }
 0x129   :  { %368 = vst [vmem:[#allocation10] sm:$0xff] %v366_v46  ;;  %v365_v50 = vmul.f32 %v363_v48, %v349_v47 }
 0x12b   :  { %v367_v51 = vmul.f32 %v365_v50, %v336_v49 }
 0x12d   :  { %369 = vst [vmem:[#allocation10 + $0x8] sm:$0xff] %v367_v51 }
 0x12e   :  { %575 = shalt.err (!%p572_p5)
}
 0x12f   :  { %s599_s3 = smov 8  }
 0x130   :  { %381 = dma.vmem_to_hbm [thread:$0]  %s376_s13, 256, %s657_s5, [#allocation6], %s592_s23, %s592_s23, %s599_s3  }
 0x131   :  { %588 = dma.done.wait [#allocation6], 256  }
 0x132   :  { %589 = vsyncadd [#allocation6], 4294967040 }
 0x133   :  { %385 = vsyncpa [#allocation5], 1 }
 0x134   :  { %386 = vsyncpa [#allocation8], 1 }
 0x135   :  { %387 = vsyncpa [#allocation6], 1 }

</bundles_post_ra>
